<compile_context>
chip_gen: v5e
topology: v5e:2x2
jax: 0.10.0
libtpu: 0.0.40
codegen_flags: <defaults>
</compile_context>

<pallas_src>
import math

import jax
import jax.numpy as jnp
from jax.experimental import pallas as pl
from jax.experimental.pallas import tpu as pltpu


def _round_up(x, m):
    return ((x + m - 1) // m) * m


# --------------------------------------------------------------------------------------
# Kernel A: node-level type-dependent Q/K/V projection (one wide stacked matmul + blend)
# --------------------------------------------------------------------------------------
def node_qkv_kernel(x_ref, ntype_ref, w_ref, b_ref, qkv_ref):
    f32 = jnp.float32
    tN, _ = x_ref.shape
    T = b_ref.shape[0]
    C = b_ref.shape[2]                                   # 3*D
    # [tN, D](bf16) @ [D, T*3D](bf16) -> f32
    proj = jnp.dot(x_ref[...], w_ref[...], preferred_element_type=f32)
    # node-type one-hot built in-kernel from the int32 column (no dense one-hot DMA)
    t_1h = (jax.lax.broadcasted_iota(jnp.int32, (tN, T), 1) == ntype_ref[...]).astype(f32)
    out = jnp.zeros((tN, C), f32)
    for t in range(T):
        out = out + t_1h[:, t:t + 1] * (proj[:, t * C:(t + 1) * C] + b_ref[t])
    qkv_ref[...] = out


# --------------------------------------------------------------------------------------
# Kernel B1: per-edge heterogeneous attention scores [E, H]
# --------------------------------------------------------------------------------------
def edge_score_kernel(q_ref, k_ref, etype_ref, ratt_ref, pri_ref, score_ref):
    f32 = jnp.float32
    tE, D = q_ref.shape
    R = ratt_ref.shape[1] // D
    H = pri_ref.shape[1]
    d_k = D // H

    # relation_att applied per head: stacked block-diagonal bf16 matmul -> [tE, R*D]
    krel_all = jnp.dot(k_ref[...], ratt_ref[...], preferred_element_type=f32)
    rel_1h = (jax.lax.broadcasted_iota(jnp.int32, (tE, R), 1) == etype_ref[...]).astype(f32)
    k_rel = jnp.zeros((tE, D), f32)
    for r in range(R):
        k_rel = k_rel + rel_1h[:, r:r + 1] * krel_all[:, r * D:(r + 1) * D]

    # per-head dot(q, k_rel): head-pooling matmul (f32)
    qk = q_ref[...].astype(f32) * k_rel
    pool = (jax.lax.broadcasted_iota(jnp.int32, (D, H), 0) // d_k ==
            jax.lax.broadcasted_iota(jnp.int32, (D, H), 1)).astype(f32)       # [D, H]
    scores = jnp.dot(qk, pool, preferred_element_type=f32)                    # [tE, H]

    # relation_pri selected per edge (VPU blend, no extra [E,H] stream from HBM)
    pri = jnp.zeros((tE, H), f32)
    for r in range(R):
        pri = pri + rel_1h[:, r:r + 1] * pri_ref[r:r + 1, :]
    score_ref[...] = scores * pri * (1.0 / math.sqrt(d_k))


# --------------------------------------------------------------------------------------
# Kernel B2: relation message transform + attention-weighted scatter-add into a [N, D]
#            VMEM accumulator, fused target-specific update (GELU/a_linear/skip/LayerNorm)
#            as the finalize step on the last edge block.
# --------------------------------------------------------------------------------------
def scatter_update_kernel(att_ref, v_ref, etype_ref, dst_ref,
                          rmsg_ref, x_ref, ntype_ref, wa_ref, ba_ref,
                          skip_ref, gamma_ref, beta_ref,
                          out_ref, aggr_ref):
    f32 = jnp.float32
    bf16 = jnp.bfloat16
    step = pl.program_id(0)

    @pl.when(step == 0)
    def _init():
        aggr_ref[...] = jnp.zeros_like(aggr_ref)

    tE, D = v_ref.shape
    R = rmsg_ref.shape[1] // D
    H = att_ref.shape[1]
    d_k = D // H
    N = x_ref.shape[0]
    T = ba_ref.shape[0]

    # relation_msg applied per head: stacked block-diagonal bf16 matmul -> [tE, R*D]
    msg_all = jnp.dot(v_ref[...], rmsg_ref[...], preferred_element_type=f32)
    rel_1h = (jax.lax.broadcasted_iota(jnp.int32, (tE, R), 1) == etype_ref[...]).astype(f32)
    msg = jnp.zeros((tE, D), f32)
    for r in range(R):
        msg = msg + rel_1h[:, r:r + 1] * msg_all[:, r * D:(r + 1) * D]

    # broadcast per-head attention across its d_k lanes and weight the messages
    headmap = (jax.lax.broadcasted_iota(jnp.int32, (H, D), 1) // d_k ==
               jax.lax.broadcasted_iota(jnp.int32, (H, D), 0)).astype(f32)    # [H, D]
    att_full = jnp.dot(att_ref[...], headmap, preferred_element_type=f32)     # [tE, D]
    weighted = (msg * att_full).astype(bf16)

    # scatter-add over destination nodes: one-hot built in-kernel from the dst row
    # (padded edges carry dst == N -> no match -> contribute nothing)
    onehot_nt = (jax.lax.broadcasted_iota(jnp.int32, (N, tE), 0) == dst_ref[...]).astype(bf16)
    aggr_ref[...] += jnp.dot(onehot_nt, weighted, preferred_element_type=f32)

    @pl.when(step == pl.num_programs(0) - 1)
    def _finalize():
        aggr = aggr_ref[...]
        # exact GELU (matches F.gelu default)
        h = 0.5 * aggr * (1.0 + jax.lax.erf(aggr * (1.0 / math.sqrt(2.0))))
        proj = jnp.dot(h.astype(bf16), wa_ref[...], preferred_element_type=f32)   # [N, T*D]
        x = x_ref[...]
        t_1h = (jax.lax.broadcasted_iota(jnp.int32, (N, T), 1) == ntype_ref[...]).astype(f32)
        alphas = jax.nn.sigmoid(skip_ref[...])                                    # [T, 1, 1]
        res = jnp.zeros((N, D), f32)
        for t in range(T):
            trans = proj[:, t * D:(t + 1) * D] + ba_ref[t]
            a = alphas[t]                                                          # [1, 1]
            comb = trans * a + x * (1.0 - a)
            mean = jnp.mean(comb, axis=-1, keepdims=True)
            var = jnp.mean((comb - mean) ** 2, axis=-1, keepdims=True)
            normed = (comb - mean) * jax.lax.rsqrt(var + 1e-5)
            normed = normed * gamma_ref[t] + beta_ref[t]
            res = res + t_1h[:, t:t + 1] * normed
        out_ref[...] = res                                                         # final dropout = id


# --------------------------------------------------------------------------------------
# Parameters
# --------------------------------------------------------------------------------------
def block_diag_heads(rel):  # [R, H, dk, dk] -> [R, H*dk, H*dk]
    R_, H_, dk, _ = rel.shape
    out = jnp.zeros((R_, H_ * dk, H_ * dk), rel.dtype)
    for h in range(H_):
        out = out.at[:, h * dk:(h + 1) * dk, h * dk:(h + 1) * dk].set(rel[:, h])
    return out


def init_params(key, in_hid, out_hid, num_types, num_relations, n_heads, max_len=240):
    assert in_hid == out_hid, "HGTConv skip connection requires in_hid == out_hid"
    d_k = out_hid // n_heads
    n_hid = in_hid
    keys = jax.random.split(key, 12)

    def glorot(k, shape, fan_in, fan_out):
        a = math.sqrt(6.0 / (fan_in + fan_out))
        return jax.random.uniform(k, shape, jnp.float32, -a, a)

    params = dict(
        n_heads=n_heads, num_types=num_types, num_relations=num_relations,
        wq=glorot(keys[0], (num_types, in_hid, out_hid), in_hid, out_hid),
        wk=glorot(keys[1], (num_types, in_hid, out_hid), in_hid, out_hid),
        wv=glorot(keys[2], (num_types, in_hid, out_hid), in_hid, out_hid),
        wa=glorot(keys[3], (num_types, out_hid, out_hid), out_hid, out_hid),
        bq=0.01 * jax.random.normal(keys[4], (num_types, out_hid), jnp.float32),
        bk=0.01 * jax.random.normal(keys[5], (num_types, out_hid), jnp.float32),
        bv=0.01 * jax.random.normal(keys[6], (num_types, out_hid), jnp.float32),
        ba=0.01 * jax.random.normal(keys[7], (num_types, out_hid), jnp.float32),
        relation_pri=jnp.ones((num_relations, n_heads), jnp.float32),
        relation_att=glorot(keys[8], (num_relations, n_heads, d_k, d_k), d_k, d_k),
        relation_msg=glorot(keys[9], (num_relations, n_heads, d_k, d_k), d_k, d_k),
        skip=jnp.ones((num_types,), jnp.float32),
        ln_gamma=jnp.ones((num_types, out_hid), jnp.float32),
        ln_beta=jnp.zeros((num_types, out_hid), jnp.float32),
    )

    # RelTemporalEncoding sinusoid table (deterministic, exactly the reference formula)
    position = jnp.arange(0.0, max_len, dtype=jnp.float32)[:, None]
    div_term = 1.0 / ((10000.0 ** jnp.arange(0.0, n_hid * 2, 2.0, dtype=jnp.float32)) / n_hid / 2.0)
    emb = jnp.zeros((max_len, n_hid * 2), jnp.float32)
    emb = emb.at[:, 0::2].set(jnp.sin(position * div_term) / math.sqrt(n_hid))
    emb = emb.at[:, 1::2].set(jnp.cos(position * div_term) / math.sqrt(n_hid))
    params["rte_emb"] = emb
    params["w_rte"] = glorot(keys[10], (n_hid * 2, n_hid), n_hid * 2, n_hid)
    params["b_rte"] = 0.01 * jax.random.normal(keys[11], (n_hid,), jnp.float32)
    return params


# --------------------------------------------------------------------------------------
# Forward
# --------------------------------------------------------------------------------------
def general_conv_hgt_forward(params, x, node_type, edge_index, edge_type, edge_time):
    f32, bf16 = jnp.float32, jnp.bfloat16
    N, D = x.shape
    H = params["n_heads"]
    T = params["num_types"]
    R = params["num_relations"]
    E = edge_index.shape[1]

    # ---- tile sizes / padding (tiles multiple of 8 rows; lane dims kept at full width) ----
    tN = min(256, _round_up(N, 8))
    N_pad = _round_up(N, tN)
    tE = min(512, _round_up(E, 8))          # 512-row edge blocks; VMEM-safe on v7x (64 MiB)
    E_pad = _round_up(E, tE)

    x_p = jnp.pad(x, ((0, N_pad - N), (0, 0)))
    ntype_p = jnp.pad(node_type.astype(jnp.int32), (0, N_pad - N))

    src = edge_index[0].astype(jnp.int32)
    dst = edge_index[1].astype(jnp.int32)
    pad_e = E_pad - E
    src_p = jnp.pad(src, (0, pad_e))
    dst_p = jnp.pad(dst, (0, pad_e))
    etype_p = jnp.pad(edge_type.astype(jnp.int32), (0, pad_e))
    etime_p = jnp.pad(edge_time.astype(jnp.int32), (0, pad_e))
    valid = jnp.arange(E_pad) < E
    dst_seg = jnp.where(valid, dst_p, N_pad).astype(jnp.int32)   # padded edges -> dummy segment

    cp_par = pltpu.CompilerParams(dimension_semantics=("parallel",))
    cp_arb = pltpu.CompilerParams(dimension_semantics=("arbitrary",))

    # ---- Kernel A: node-level q/k/v projection (stacked per-type weights, bf16 MXU) ----
    w_all = jnp.concatenate(
        [jnp.concatenate([params["wq"][t], params["wk"][t], params["wv"][t]], axis=1)
         for t in range(T)], axis=1).astype(bf16)                               # [D, T*3D]
    b_all = jnp.stack(
        [jnp.concatenate([params["bq"][t], params["bk"][t], params["bv"][t]], axis=0)
         for t in range(T)], axis=0)[:, None, :]                                # [T, 1, 3D]

    qkv = pl.pallas_call(
        node_qkv_kernel,
        grid=(N_pad // tN,),
        in_specs=[
            pl.BlockSpec((tN, D), lambda i: (i, 0)),
            pl.BlockSpec((tN, 1), lambda i: (i, 0)),
            pl.BlockSpec((D, T * 3 * D), lambda i: (0, 0)),
            pl.BlockSpec((T, 1, 3 * D), lambda i: (0, 0, 0)),
        ],
        out_specs=pl.BlockSpec((tN, 3 * D), lambda i: (i, 0)),
        out_shape=jax.ShapeDtypeStruct((N_pad, 3 * D), f32),
        compiler_params=cp_par,
    )(x_p.astype(bf16), ntype_p[:, None], w_all, b_all)
    q_nodes, k_nodes, v_nodes = qkv[:, :D], qkv[:, D:2 * D], qkv[:, 2 * D:]

    # ---- RelTemporalEncoding folded into per-(type, time) tables (tiny precompute) ----
    rte_lin = params["rte_emb"] @ params["w_rte"] + params["b_rte"]             # [L, D]
    rte_k_tab = jnp.einsum("ld,tdo->tlo", rte_lin, params["wk"])                # [T, L, D]
    rte_v_tab = jnp.einsum("ld,tdo->tlo", rte_lin, params["wv"])                # [T, L, D]

    src_type = ntype_p[src_p]
    q_dst = q_nodes[dst_p]
    k_src = k_nodes[src_p] + rte_k_tab[src_type, etime_p]
    v_src = v_nodes[src_p] + rte_v_tab[src_type, etime_p]

    # ---- relation block-diag matrices stacked along columns (bf16) ----
    ratt_all = jnp.concatenate(list(block_diag_heads(params["relation_att"])), axis=1).astype(bf16)
    rmsg_all = jnp.concatenate(list(block_diag_heads(params["relation_msg"])), axis=1).astype(bf16)

    # ---- Kernel B1: attention scores per edge ----
    scores = pl.pallas_call(
        edge_score_kernel,
        grid=(E_pad // tE,),
        in_specs=[
            pl.BlockSpec((tE, D), lambda i: (i, 0)),        # q[dst]
            pl.BlockSpec((tE, D), lambda i: (i, 0)),        # k[src] + RTE
            pl.BlockSpec((tE, 1), lambda i: (i, 0)),        # edge_type column
            pl.BlockSpec((D, R * D), lambda i: (0, 0)),     # relation_att (resident)
            pl.BlockSpec((R, H), lambda i: (0, 0)),         # relation_pri (resident)
        ],
        out_specs=pl.BlockSpec((tE, H), lambda i: (i, 0)),
        out_shape=jax.ShapeDtypeStruct((E_pad, H), f32),
        compiler_params=cp_par,
    )(q_dst.astype(bf16), k_src.astype(bf16), etype_p[:, None], ratt_all, params["relation_pri"])

    # ---- segment softmax over destination node (cross-tile reduction, f32, O(E*H)) ----
    seg_max = jax.ops.segment_max(scores, dst_seg, num_segments=N_pad + 1)
    p_exp = jnp.exp(scores - seg_max[dst_seg])
    seg_sum = jax.ops.segment_sum(p_exp, dst_seg, num_segments=N_pad + 1)
    att = p_exp / (seg_sum[dst_seg] + 1e-16)
    att = jnp.where(valid[:, None], att, 0.0)               # padded edges contribute nothing

    # ---- Kernel B2: weighted message scatter-add + fused target-specific update ----
    wa_all = jnp.concatenate(list(params["wa"]), axis=1).astype(bf16)            # [D, T*D]
    out_pad = pl.pallas_call(
        scatter_update_kernel,
        grid=(E_pad // tE,),
        in_specs=[
            pl.BlockSpec((tE, H), lambda i: (i, 0)),        # att
            pl.BlockSpec((tE, D), lambda i: (i, 0)),        # v[src] + RTE
            pl.BlockSpec((tE, 1), lambda i: (i, 0)),        # edge_type column
            pl.BlockSpec((1, tE), lambda i: (0, i)),        # dst row (scatter target)
            pl.BlockSpec((D, R * D), lambda i: (0, 0)),     # relation_msg (resident)
            pl.BlockSpec((N_pad, D), lambda i: (0, 0)),     # x (resident, for skip + LN)
            pl.BlockSpec((N_pad, 1), lambda i: (0, 0)),     # node_type column (resident)
            pl.BlockSpec((D, T * D), lambda i: (0, 0)),     # a_linear weights (resident)
            pl.BlockSpec((T, 1, D), lambda i: (0, 0, 0)),   # a_linear bias
            pl.BlockSpec((T, 1, 1), lambda i: (0, 0, 0)),   # skip
            pl.BlockSpec((T, 1, D), lambda i: (0, 0, 0)),   # LN gamma
            pl.BlockSpec((T, 1, D), lambda i: (0, 0, 0)),   # LN beta
        ],
        out_specs=pl.BlockSpec((N_pad, D), lambda i: (0, 0)),
        out_shape=jax.ShapeDtypeStruct((N_pad, D), f32),
        scratch_shapes=[pltpu.VMEM((N_pad, D), f32)],       # per-node accumulator
        compiler_params=cp_arb,
    )(att, v_src.astype(bf16), etype_p[:, None], dst_seg[None, :],
      rmsg_all, x_p, ntype_p[:, None], wa_all,
      params["ba"][:, None, :], params["skip"][:, None, None],
      params["ln_gamma"][:, None, :], params["ln_beta"][:, None, :])

    return out_pad[:N]


if __name__ == "__main__":
    IN_HID = OUT_HID = 32
    NUM_TYPES = 2
    NUM_RELATIONS = 2
    N_HEADS = 4
    N_NODES = 16
    N_EDGES = 32
    MAX_LEN = 240

    root = jax.random.PRNGKey(0)
    k_par, k_x, k_nt, k_e, k_et, k_tm = jax.random.split(root, 6)

    params = init_params(k_par, IN_HID, OUT_HID, NUM_TYPES, NUM_RELATIONS, N_HEADS, MAX_LEN)

    meta_xs = jax.random.normal(k_x, (N_NODES, IN_HID), jnp.float32)
    node_type = jax.random.randint(k_nt, (N_NODES,), 0, NUM_TYPES, dtype=jnp.int32)
    edge_index = jax.random.randint(k_e, (2, N_EDGES), 0, N_NODES, dtype=jnp.int32)
    edge_type = jax.random.randint(k_et, (N_EDGES,), 0, NUM_RELATIONS, dtype=jnp.int32)
    edge_time = jax.random.randint(k_tm, (N_EDGES,), 0, MAX_LEN, dtype=jnp.int32)

    out = general_conv_hgt_forward(params, meta_xs, node_type, edge_index, edge_type, edge_time)
    out = jax.block_until_ready(out)

    assert out.shape == (N_NODES, OUT_HID), out.shape
    assert bool(jnp.all(jnp.isfinite(out)))
    print("KERNEL_OK")
</pallas_src>

<mosaic_0001>
module attributes {stable_mosaic.version = 11 : i64} {
  func.func @node_qkv_kernel(%arg0: i32, %arg1: memref<16x32xbf16, #tpu.memory_space<vmem>>, %arg2: memref<16x1xi32, #tpu.memory_space<vmem>>, %arg3: memref<32x192xbf16, #tpu.memory_space<vmem>>, %arg4: memref<2x1x96xf32, #tpu.memory_space<vmem>>, %arg5: memref<16x96xf32, #tpu.memory_space<vmem>>) attributes {dimension_semantics = [#tpu.dimension_semantics<parallel>], iteration_bounds = array<i64: 1>, scalar_prefetch = 0 : i64, scratch_operands = 0 : i64, tpu.core_type = #tpu.core_type<tc>, window_params = [{transform_indices = @transform_0, window_bounds = array<i64: 16, 32>}, {transform_indices = @transform_1, window_bounds = array<i64: 16, 1>}, {pipeline_mode = #tpu.pipeline_mode<synchronous>, transform_indices = @transform_2, window_bounds = array<i64: 32, 192>}, {pipeline_mode = #tpu.pipeline_mode<synchronous>, transform_indices = @transform_3, window_bounds = array<i64: 2, 1, 96>}, {transform_indices = @transform_4, window_bounds = array<i64: 16, 96>}]} {
    %c0 = arith.constant 0 : index
    %c0_0 = arith.constant 0 : index
    %0 = vector.load %arg1[%c0, %c0_0] : memref<16x32xbf16, #tpu.memory_space<vmem>>, vector<16x32xbf16>
    %c0_1 = arith.constant 0 : index
    %c0_2 = arith.constant 0 : index
    %1 = vector.load %arg3[%c0_1, %c0_2] : memref<32x192xbf16, #tpu.memory_space<vmem>>, vector<32x192xbf16>
    %cst = arith.constant dense<0.000000e+00> : vector<16x192xf32>
    %2 = tpu.matmul %0, %1, %cst {dimension_numbers = #tpu.dot_dimension_numbers<[1], [0], [0], [1], [0, 0, 1, 1], [], []>} : vector<16x32xbf16>, vector<32x192xbf16>, vector<16x192xf32> -> vector<16x192xf32>
    %3 = tpu.iota {dimensions = array<i32: 1>} : vector<16x2xi32>
    %c0_3 = arith.constant 0 : index
    %c0_4 = arith.constant 0 : index
    %4 = vector.load %arg2[%c0_3, %c0_4] : memref<16x1xi32, #tpu.memory_space<vmem>>, vector<16x1xi32>
    %5 = vector.broadcast %4 : vector<16x1xi32> to vector<16x2xi32>
    %6 = arith.cmpi eq, %3, %5 : vector<16x2xi32>
    %7 = arith.extui %6 : vector<16x2xi1> to vector<16x2xi32>
    %8 = arith.sitofp %7 : vector<16x2xi32> to vector<16x2xf32>
    %cst_5 = arith.constant 0.000000e+00 : f32
    %9 = vector.broadcast %cst_5 : f32 to vector<16x96xf32>
    %10 = vector.extract_strided_slice %8 {offsets = [0, 0], sizes = [16, 1], strides = [1, 1]} : vector<16x2xf32> to vector<16x1xf32>
    %11 = vector.extract_strided_slice %2 {offsets = [0, 0], sizes = [16, 96], strides = [1, 1]} : vector<16x192xf32> to vector<16x96xf32>
    %c0_6 = arith.constant 0 : index
    %c0_7 = arith.constant 0 : index
    %c0_8 = arith.constant 0 : index
    %12 = vector.load %arg4[%c0_6, %c0_7, %c0_8] : memref<2x1x96xf32, #tpu.memory_space<vmem>>, vector<1x1x96xf32>
    %13 = vector.shape_cast %12 : vector<1x1x96xf32> to vector<1x96xf32>
    %14 = vector.broadcast %13 : vector<1x96xf32> to vector<16x96xf32>
    %15 = arith.addf %11, %14 : vector<16x96xf32>
    %16 = vector.broadcast %10 : vector<16x1xf32> to vector<16x96xf32>
    %17 = arith.mulf %16, %15 : vector<16x96xf32>
    %18 = arith.addf %9, %17 : vector<16x96xf32>
    %19 = vector.extract_strided_slice %8 {offsets = [0, 1], sizes = [16, 1], strides = [1, 1]} : vector<16x2xf32> to vector<16x1xf32>
    %20 = vector.extract_strided_slice %2 {offsets = [0, 96], sizes = [16, 96], strides = [1, 1]} : vector<16x192xf32> to vector<16x96xf32>
    %c1 = arith.constant 1 : index
    %c0_9 = arith.constant 0 : index
    %c0_10 = arith.constant 0 : index
    %21 = vector.load %arg4[%c1, %c0_9, %c0_10] : memref<2x1x96xf32, #tpu.memory_space<vmem>>, vector<1x1x96xf32>
    %22 = vector.shape_cast %21 : vector<1x1x96xf32> to vector<1x96xf32>
    %23 = vector.broadcast %22 : vector<1x96xf32> to vector<16x96xf32>
    %24 = arith.addf %20, %23 : vector<16x96xf32>
    %25 = vector.broadcast %19 : vector<16x1xf32> to vector<16x96xf32>
    %26 = arith.mulf %25, %24 : vector<16x96xf32>
    %27 = arith.addf %18, %26 : vector<16x96xf32>
    %c0_11 = arith.constant 0 : index
    %c0_12 = arith.constant 0 : index
    %28 = vector.load %arg5[%c0_11, %c0_12] : memref<16x96xf32, #tpu.memory_space<vmem>>, vector<16x96xf32>
    tpu.vector_store %arg5[%c0_11, %c0_12], %27 {strides = array<i32>} : memref<16x96xf32, #tpu.memory_space<vmem>>, vector<16x96xf32>,
    return
  }
  func.func @transform_0(%arg0: i32) -> (i32, i32) {
    %c0_i32 = arith.constant 0 : i32
    %c0_i32_0 = arith.constant 0 : i32
    return %arg0, %c0_i32 : i32, i32
  }
  func.func @transform_1(%arg0: i32) -> (i32, i32) {
    %c0_i32 = arith.constant 0 : i32
    %c0_i32_0 = arith.constant 0 : i32
    return %arg0, %c0_i32 : i32, i32
  }
  func.func @transform_2(%arg0: i32) -> (i32, i32) {
    %c0_i32 = arith.constant 0 : i32
    %c0_i32_0 = arith.constant 0 : i32
    %c0_i32_1 = arith.constant 0 : i32
    return %c0_i32, %c0_i32_0 : i32, i32
  }
  func.func @transform_3(%arg0: i32) -> (i32, i32, i32) {
    %c0_i32 = arith.constant 0 : i32
    %c0_i32_0 = arith.constant 0 : i32
    %c0_i32_1 = arith.constant 0 : i32
    %c0_i32_2 = arith.constant 0 : i32
    return %c0_i32, %c0_i32_0, %c0_i32_1 : i32, i32, i32
  }
  func.func @transform_4(%arg0: i32) -> (i32, i32) {
    %c0_i32 = arith.constant 0 : i32
    %c0_i32_0 = arith.constant 0 : i32
    return %arg0, %c0_i32 : i32, i32
  }
}

</mosaic_0001>

<bundles_post_ra>
// kernel: tpu_custom_call.1
= control target key start
LH: loop header
LB: loop body
LE: loop exit
PB: predicated region body
PF: predicated region fallthrough
CT: control target
= control target key end

     0   :  { %9 = vsyncpa [#allocation3], 0  ;;  %s369_s0 = inlined_call_operand.vmem [shape: bf16[16,32], index: 0, kind: input, shape index: {}]   ;;  %s370_s1 = inlined_call_operand.vmem [shape: s32[16,1], index: 1, kind: input, shape index: {}]   ;;  %s371_s2 = inlined_call_operand.hbm [shape: bf16[32,192], index: 2, kind: input, shape index: {}]   ;;  %s372_s3 = inlined_call_operand.vmem [shape: f32[2,1,96], index: 3, kind: input, shape index: {}]   ;;  %s373_s4 = inlined_call_operand.hbm [shape: f32[16,96], index: 4, kind: output, shape index: {}]  }
   0x1   :  { %10 = vsyncpa [#allocation4], 0  ;;  %s19_s17 = sshll.u32 %s371_s2, 4  ;;  %s304_s18 = smov [#allocation2]   ;;  %s20_s17 = int_to_ptr.hbm [resolvable:$true] %s19_s17 }
   0x2   :  { %s21_s19 = sshll.u32 %s304_s18, 4  ;;  %s305_s20 = smov 128   ;;  %s22_s19 = int_to_ptr.vmem [resolvable:$true] %s21_s19 }
   0x3   :  { %s306_s21 = smov 8  }
   0x4   :  { %27 = dma.hbm_to_vmem [thread:$0]  %s20_s17, 512, %s22_s19, [#allocation3], %s305_s20, %s305_s20, %s306_s21  }
   0x5   :  { %300 = dma.done.wait [#allocation3], 512  }
   0x6   :  { %301 = vsyncadd [#allocation3], 4294966784  ;;  %v307_v0 = vmov 0   ;;  %v100_v1 = vld [vmem:[%s370_s1] sm:$0xff]  ;;  %v211_v2 = vld [vmem:[#allocation2 + $0x10] sm:$0xf]  ;;  %v98_v18 = vlaneseq }
   0x7   :  { %236 = vset.pattern.permute.xlu0 %v307_v0  ;;  %243 = vset.pattern.permute.xlu2 %v307_v0  ;;  %v226_v3 = vld [vmem:[#allocation2 + $0x14] sm:$0xf0]  ;;  %v203_v4 = vld [vmem:[#allocation2] sm:$0xf]  ;;  %v224_v5 = vld [vmem:[#allocation2 + $0x4] sm:$0xf0] }
   0x8   :  { %103 = vperm.xlu0 %236, %v100_v1   ;;  %v212_v6 = vor.u32 %v226_v3, %v211_v2  ;;  %v225_v7 = vld [vmem:[#allocation2 + $0x14] sm:$0xf]  ;;  %v213_v8 = vld [vmem:[#allocation2 + $0x18] sm:$0xf0]  ;;  %v223_v10 = vld [vmem:[#allocation2 + $0x4] sm:$0xf]  ;;  %v204_v12 = vor.u32 %v224_v5, %v203_v4 }
   0x9   :  { %v216_v9 = vor.u32 %v225_v7, %v213_v8  ;;  %v205_v11 = vld [vmem:[#allocation2 + $0x8] sm:$0xf0]  ;;  %v222_v15 = vld [vmem:[%s369_s0] sm:$0xff]  ;;  %vm66_vm0 = vcmask 261120   ;;  %s308_s29 = smov 96   ;;  %v309_v17 = vmov 1  }
   0xa   :  { %76 = vmatpush.bf16.msra.mxu0 %v212_v6  ;;  %v208_v13 = vor.u32 %v223_v10, %v205_v11  ;;  %v101_v14 = vld [vmem:[%s370_s1 + $0x8] sm:$0xff]  ;;  %v250_v16 = vld [vmem:[%s372_s3 + $0x1] ss:$0 sm:$0xff]  ;;  %237 = vset.pattern.permute.xlu1 %v309_v17  ;;  %v99_v20 = vand.u32 127, %v98_v18  ;;  %v310_v22 = vmov 0.0   ;;  %s311_s0 = smov 32  }
   0xb   :  { %90 = vmatpush.bf16.msra.mxu1 %v216_v9  ;;  %138 = vrot.lane.b32.xlu1 %v250_v16, %s308_s29  ;;  %v251_v44 = vld [vmem:[%s372_s3] ss:$0 sm:$0xff]  ;;  %s312_s5 = smov [#allocation5]   ;;  %s184_s9 = sshll.u32 %s373_s4, 4  ;;  %vm175_vm3 = vcmask 785408   ;;  %s185_s9 = int_to_ptr.hbm [resolvable:$true] %s184_s9 }
   0xc   :  { %s182_s6 = sshll.u32 %s312_s5, 4  ;;  %s183_s6 = int_to_ptr.vmem [resolvable:$true] %s182_s6 }
   0xe   :  { %77 = vmatpush.bf16.msra.mxu0 %v204_v12 }
   0xf   :  { %91 = vmatpush.bf16.msra.mxu1 %v208_v13 }
  0x10   :  { %106 = vperm.xlu0 %236, %v101_v14  }
  0x11   :  { %217 = vmatmul.msk.bf16.vlgmr.msra.gmra.mxu0 %vm66_vm0, %v222_v15 }
  0x12   :  { %218 = vmatmul.msk.bf16.vlgmr.msra.gmra.mxu1 %vm66_vm0, %v222_v15 }
  0x18   :  { %249 = vset.pattern.permute.xlu0 %v309_v17 }
  0x7a   :  { %v104_v19 = vpop.permute.xlu0 %103 }
  0x7b   :  { %vm108_vm1 = vcmp.eq.s32.totalorder %v99_v20, %v104_v19 }
  0x7c   :  { %v219_v23 = vsel %vm108_vm1, 1.0, %v310_v22 }
  0x7d   :  { %v139_v27 = vpop.permute.xlu1 %138 }
  0x82   :  { %v107_v21 = vpop.permute.xlu0 %106 }
  0x83   :  { %vm109_vm2 = vcmp.eq.s32.totalorder %v99_v20, %v107_v21 }
  0x84   :  { %v220_v24 = vsel %vm109_vm2, 1.0, %v310_v22 }
  0x85   :  { %v238_v25 = vpack.i.bf16 %v220_v24, %v219_v23 }
  0x87   :  { %245 = vperm.xlu2 %243, %v238_v25   ;;  %239 = vperm.xlu1 %237, %v238_v25  }
  0x8e   :  { %v79_v26 = vpop.f32.mrf.mxu0 }
  0x8f   :  { %v93_v28 = vpop.f32.mrf.mxu1  ;;  %v141_v31 = vadd.f32 %v139_v27, %v79_v26  ;;  %v118_v45 = vadd.f32 %v251_v44, %v79_v26 }
  0x90   :  { %v142_v34 = vadd.f32 %v139_v27, %v93_v28 }
  0x96   :  { %v81_v29 = vpop.f32.mrf.mxu0 }
  0x97   :  { %v143_v35 = vadd.f32 %v139_v27, %v81_v29  ;;  %v95_v39 = vpop.f32.mrf.mxu1  ;;  %v119_v48 = vadd.f32 %v251_v44, %v81_v29 }
  0x98   :  { %v144_v40 = vadd.f32 %v139_v27, %v95_v39 }
  0xe1   :  { %v246_v42 = vpop.permute.xlu2 %245 }
  0xe2   :  { %v247_v46 = vunpack.i.l.bf16 %v246_v42  ;;  %v248_v47 = vunpack.i.h.bf16 %v246_v42 }
  0xe4   :  { %v130_v49 = vmul.f32 %v247_v46, %v118_v45  ;;  %v131_v51 = vmul.f32 %v248_v47, %v119_v48 }
  0xf9   :  { %v240_v30 = vpop.permute.xlu1 %239 }
  0xfa   :  { %v242_v32 = vunpack.i.h.bf16 %v240_v30  ;;  %v241_v33 = vunpack.i.l.bf16 %v240_v30 }
  0xfc   :  { %v153_v36 = vmul.f32 %v241_v33, %v141_v31  ;;  %v154_v37 = vmul.f32 %v241_v33, %v142_v34  ;;  %v155_v38 = vmul.f32 %v242_v32, %v143_v35  ;;  %v156_v41 = vmul.f32 %v242_v32, %v144_v40 }
  0xfe   :  { %163 = vrot.lane.b32.xlu0 %v154_v37, %s311_s0  ;;  %161 = vrot.lane.b32.xlu2 %v153_v36, %s311_s0 }
  0xff   :  { %165 = vrot.lane.b32.xlu1 %v155_v38, %s311_s0 }
 0x106   :  { %167 = vrot.lane.b32.xlu2 %v156_v41, %s311_s0 }
 0x158   :  { %v162_v43 = vpop.permute.xlu2 %161 }
 0x160   :  { %v168_v52 = vpop.permute.xlu2 %167 }
 0x170   :  { %v164_v50 = vpop.permute.xlu0 %163 }
 0x171   :  { %v169_v53 = vsel %vm66_vm0, %v162_v43, %v164_v50  ;;  %v166_v54 = vpop.permute.xlu1 %165 }
 0x172   :  { %v173_v55 = vadd.f32 %v169_v53, %v130_v49  ;;  %v170_v56 = vsel %vm66_vm0, %v166_v54, %v168_v52 }
 0x173   :  { %v174_v57 = vadd.f32 %v170_v56, %v131_v51 }
 0x174   :  { %176 = vst.msk [vmem:[#allocation5] sm:$0xff] %vm175_vm3, %v173_v55 }
 0x175   :  { %177 = vst.msk [vmem:[#allocation5 + $0x8] sm:$0xff] %vm175_vm3, %v174_v57 }
 0x176   :  { %190 = dma.vmem_to_hbm [thread:$0]  %s183_s6, 256, %s185_s9, [#allocation4], %s305_s20, %s305_s20, %s306_s21  }
 0x177   :  { %302 = dma.done.wait [#allocation4], 256  }
 0x178   :  { %303 = vsyncadd [#allocation4], 4294967040 }
 0x179   :  { %195 = vsyncpa [#allocation3], 1 }
 0x17a   :  { %196 = vsyncpa [#allocation4], 1 }

</bundles_post_ra>
